<compile_context>
chip_gen: v7x
topology: tpu7x:2x2x1
jax: 0.10.0
libtpu: 0.0.40
codegen_flags: <defaults>
</compile_context>

<pallas_src>
import functools
import string

import jax
import jax.numpy as jnp
from jax import lax
from jax.experimental import pallas as pl
from jax.experimental.pallas import tpu as pltpu


def _lstm_seq_kernel(xb_ref,      # VMEM (T, B, 4H) f32
                     len_ref,     # VMEM (B, 1) int32
                     whh_ref,     # VMEM (H, 4H)   matmul dtype
                     h0_ref,      # VMEM (B, H) f32
                     c0_ref,      # VMEM (B, H) f32
                     wlin_ref,    # VMEM (H, Opad) matmul dtype
                     blin_ref,    # VMEM (1, Opad) f32
                     out_ref,     # VMEM (B, Opad) f32  final-step log-probs
                     hn_ref,      # VMEM (B, H) f32
                     cn_ref,      # VMEM (B, H) f32
                     *, seq_len, hidden_size):
    H = hidden_size
    lens = len_ref[...]                                   # (B, 1), loop-invariant

    def step(t, carry):
        h, c = carry
        xb = xb_ref[t]                                    # (B, 4H): x@W_ih^T + bias
        # gates = h @ W_hh^T + xb   (gate column order [i, f, o, g])
        gates = jnp.dot(h.astype(whh_ref.dtype), whh_ref[...],
                        preferred_element_type=jnp.float32) + xb
        sig = jax.nn.sigmoid(gates[:, :3 * H])            # one pass: i, f, o
        i_g = sig[:, 0 * H:1 * H]
        f_g = sig[:, 1 * H:2 * H]
        o_g = sig[:, 2 * H:3 * H]
        g_g = jnp.tanh(gates[:, 3 * H:4 * H])
        c_new = f_g * c + i_g * g_g
        h_new = o_g * jnp.tanh(c_new)
        active = t < lens                                 # (B, 1) ragged mask
        return (jnp.where(active, h_new, h), jnp.where(active, c_new, c))

    h, c = lax.fori_loop(0, seq_len, step, (h0_ref[...], c0_ref[...]),
                         unroll=(seq_len <= 32))          # names are short
    hn_ref[...] = h
    cn_ref[...] = c

    # Epilogue: Linear -> LogSoftmax (padded columns carry -1e30 bias, zero weight)
    logits = (jnp.dot(h.astype(wlin_ref.dtype), wlin_ref[...],
                      preferred_element_type=jnp.float32) + blin_ref[...])
    m = jnp.max(logits, axis=-1, keepdims=True)
    shifted = logits - m
    lse = jnp.log(jnp.sum(jnp.exp(shifted), axis=-1, keepdims=True))
    out_ref[...] = shifted - lse


def _permute_gates(a, axis=0):
    """PyTorch LSTM packs gates as [i, f, g, o]; reorder to [i, f, o, g]."""
    i, f, g, o = jnp.split(a, 4, axis=axis)
    return jnp.concatenate([i, f, o, g], axis=axis)


def lstm_forward_batched(letter_idx, lengths, h0, c0, params, *,
                         matmul_dtype=jnp.bfloat16):
    """Run B (ragged) names through the LSTM in one pallas_call.

    letter_idx: (B, T_max) int32 alphabet indices (padding value is irrelevant).
    lengths   : (B,) int32 true lengths; state updates are frozen past them.
    h0, c0    : (B, H) initial state.
    Returns (log_probs (B, O) of each name's final step, hn (B, H), cn (B, H)).
    """
    w_ih, w_hh, b_ih, b_hh, w_lin, b_lin = params
    H = w_hh.shape[1]
    O = w_lin.shape[0]
    O_pad = 128 * pl.cdiv(O, 128)
    B, T_max = letter_idx.shape

    # Prep (plain XLA, once per call): gate-permute, fold bias into the gathered
    # W_ih^T rows (one-hot input matmul + bias add eliminated from the per-step
    # critical path), and lay xb out as (T, B, 4H) so the kernel indexes the
    # leading untiled axis each step from one resident slab.
    wih_rows = _permute_gates(w_ih.astype(jnp.float32), axis=0).T          # (I, 4H)
    bias = _permute_gates((b_ih + b_hh).astype(jnp.float32), axis=0)       # (4H,)
    xb = wih_rows[letter_idx.astype(jnp.int32)] + bias                     # (B, T, 4H)
    xb = jnp.transpose(xb, (1, 0, 2))                                      # (T, B, 4H)

    whh_t = _permute_gates(w_hh.astype(jnp.float32), axis=0).T.astype(matmul_dtype)
    wlin_t = jnp.zeros((H, O_pad), matmul_dtype).at[:, :O].set(
        w_lin.T.astype(matmul_dtype))
    blin = jnp.full((1, O_pad), -1e30, jnp.float32).at[0, :O].set(
        b_lin.astype(jnp.float32))

    lens2d = lengths.astype(jnp.int32).reshape(B, 1)
    h0 = h0.astype(jnp.float32).reshape(B, H)
    c0 = c0.astype(jnp.float32).reshape(B, H)

    const2 = lambda i: (0, 0)
    kernel = functools.partial(_lstm_seq_kernel, seq_len=T_max, hidden_size=H)

    out, hn, cn = pl.pallas_call(
        kernel,
        grid=(1,),                                     # whole recurrence in-kernel
        in_specs=[
            pl.BlockSpec((T_max, B, 4 * H), lambda i: (0, 0, 0)),  # xb slab
            pl.BlockSpec((B, 1), const2),              # lengths
            pl.BlockSpec((H, 4 * H), const2),          # W_hh^T  (VMEM-resident)
            pl.BlockSpec((B, H), const2),              # h0
            pl.BlockSpec((B, H), const2),              # c0
            pl.BlockSpec((H, O_pad), const2),          # W_lin^T (VMEM-resident)
            pl.BlockSpec((1, O_pad), const2),          # b_lin
        ],
        out_specs=(
            pl.BlockSpec((B, O_pad), const2),          # log-probs (final step)
            pl.BlockSpec((B, H), const2),              # hn
            pl.BlockSpec((B, H), const2),              # cn
        ),
        out_shape=(
            jax.ShapeDtypeStruct((B, O_pad), jnp.float32),
            jax.ShapeDtypeStruct((B, H), jnp.float32),
            jax.ShapeDtypeStruct((B, H), jnp.float32),
        ),
        compiler_params=pltpu.CompilerParams(
            dimension_semantics=("arbitrary",)),
    )(xb, lens2d, whh_t, h0, c0, wlin_t, blin)

    # TODO(synk): on v7x, add a leading "parallel" grid axis over batch blocks
    # (or a 2-core core_map) to shard independent names across the 2 TensorCores.
    return out[:, :O], hn, cn


def lstm_forward(letter_idx, hidden, c, params, *, matmul_dtype=jnp.bfloat16):
    """Whole-name forward matching the PyTorch module (final-step outputs).

    letter_idx: (T,) int32 alphabet indices (rows of the one-hot input).
    hidden, c : (1, 1, H) initial state (PyTorch layout).
    Returns (log_probs (1, 1, O), hn (1, 1, H), cn (1, 1, H)).
    """
    H = params[1].shape[1]
    O = params[4].shape[0]
    T = int(letter_idx.shape[0])
    out, hn, cn = lstm_forward_batched(
        letter_idx.astype(jnp.int32).reshape(1, T),
        jnp.array([T], jnp.int32),
        hidden.reshape(1, H), c.reshape(1, H), params,
        matmul_dtype=matmul_dtype)
    # TODO(synk): only the final-step log-probs are emitted (what the name
    # classifier consumes); per-step rr outputs would need an extra (T, O) out.
    return out.reshape(1, 1, O), hn.reshape(1, 1, H), cn.reshape(1, 1, H)


def init_params(key, input_size, hidden_size, output_size):
    """Deterministic init mimicking PyTorch's U(-1/sqrt(H), 1/sqrt(H))."""
    ks = jax.random.split(key, 6)
    bound = 1.0 / jnp.sqrt(hidden_size)
    u = lambda k, shape: jax.random.uniform(k, shape, jnp.float32, -bound, bound)
    return (u(ks[0], (4 * hidden_size, input_size)),
            u(ks[1], (4 * hidden_size, hidden_size)),
            u(ks[2], (4 * hidden_size,)),
            u(ks[3], (4 * hidden_size,)),
            u(ks[4], (output_size, hidden_size)),
            u(ks[5], (output_size,)))


def reference_forward(letter_idx, hidden, c, params, n_letters):
    """Pure-JAX f32 reference: nn.LSTM step loop -> Linear -> LogSoftmax."""
    hp = jax.lax.Precision.HIGHEST
    w_ih, w_hh, b_ih, b_hh, w_lin, b_lin = [p.astype(jnp.float32) for p in params]
    H = w_hh.shape[-1]
    h = hidden.reshape(1, H).astype(jnp.float32)
    cc = c.reshape(1, H).astype(jnp.float32)
    for t in range(int(letter_idx.shape[0])):
        x = jnp.zeros((1, n_letters), jnp.float32).at[0, letter_idx[t]].set(1.0)
        gates = (jnp.dot(x, w_ih.T, precision=hp)
                 + jnp.dot(h, w_hh.T, precision=hp) + b_ih + b_hh)
        i_g = jax.nn.sigmoid(gates[:, 0 * H:1 * H])
        f_g = jax.nn.sigmoid(gates[:, 1 * H:2 * H])
        g_g = jnp.tanh(gates[:, 2 * H:3 * H])
        o_g = jax.nn.sigmoid(gates[:, 3 * H:4 * H])
        cc = f_g * cc + i_g * g_g
        h = o_g * jnp.tanh(cc)
    logits = jnp.dot(h, w_lin.T, precision=hp) + b_lin
    return jax.nn.log_softmax(logits, axis=-1), h, cc


if __name__ == "__main__":
    all_letters = string.ascii_letters + " .,;'"
    n_letters = len(all_letters)          # 57
    n_hidden = 128
    n_categories = 18                     # classic names-classifier category count

    key = jax.random.PRNGKey(0)
    params = init_params(key, n_letters, n_hidden, n_categories)

    def name_to_idx(name):
        return jnp.array([all_letters.find(ch) for ch in name], jnp.int32)

    # ---- single name (module semantics), default bf16 MXU operands ----
    line = "Bai"
    letter_idx = name_to_idx(line)
    hidden = jnp.zeros((1, 1, n_hidden), jnp.float32)
    c = jnp.zeros((1, 1, n_hidden), jnp.float32)

    log_probs, hn, cn = lstm_forward(letter_idx, hidden, c, params)
    jax.block_until_ready((log_probs, hn, cn))

    assert log_probs.shape == (1, 1, n_categories)
    assert hn.shape == (1, 1, n_hidden) and cn.shape == (1, 1, n_hidden)
    assert abs(float(jnp.sum(jnp.exp(log_probs))) - 1.0) < 1e-3

    ref_lp, ref_h, ref_c = reference_forward(letter_idx, hidden, c, params, n_letters)
    assert float(jnp.max(jnp.abs(log_probs.reshape(1, -1) - ref_lp))) < 2e-2
    assert float(jnp.max(jnp.abs(hn.reshape(1, -1) - ref_h))) < 2e-2
    assert float(jnp.max(jnp.abs(cn.reshape(1, -1) - ref_c))) < 2e-2

    # ---- f32 recurrent-weight option (tighter match for long names) ----
    lp32, h32, c32 = lstm_forward(letter_idx, hidden, c, params,
                                  matmul_dtype=jnp.float32)
    jax.block_until_ready((lp32, h32, c32))
    assert float(jnp.max(jnp.abs(lp32.reshape(1, -1) - ref_lp))) < 1e-2
    assert float(jnp.max(jnp.abs(h32.reshape(1, -1) - ref_h))) < 1e-2

    # ---- batched path: several ragged names in one pallas_call ----
    names = ["Bai", "Satoshi", "Jackson", "O'Neal"]
    B = len(names)
    T_max = max(len(n) for n in names)
    lens = jnp.array([len(n) for n in names], jnp.int32)
    idx_pad = jnp.stack(
        [jnp.pad(name_to_idx(n), (0, T_max - len(n))) for n in names])
    h0 = jnp.zeros((B, n_hidden), jnp.float32)
    c0 = jnp.zeros((B, n_hidden), jnp.float32)

    blp, bh, bc = lstm_forward_batched(idx_pad, lens, h0, c0, params,
                                       matmul_dtype=jnp.float32)
    jax.block_until_ready((blp, bh, bc))
    assert blp.shape == (B, n_categories)
    for b, name in enumerate(names):
        rlp, rh, rc = reference_forward(name_to_idx(name), hidden, c,
                                        params, n_letters)
        assert float(jnp.max(jnp.abs(blp[b] - rlp.reshape(-1)))) < 1e-2
        assert float(jnp.max(jnp.abs(bh[b] - rh.reshape(-1)))) < 1e-2
        assert float(jnp.max(jnp.abs(bc[b] - rc.reshape(-1)))) < 1e-2

    print("KERNEL_OK")
</pallas_src>

<mosaic_0001>
module attributes {stable_mosaic.version = 11 : i64} {
  func.func @_lstm_seq_kernel(%arg0: i32, %arg1: memref<3x1x512xf32, #tpu.memory_space<vmem>>, %arg2: memref<1x1xi32, #tpu.memory_space<vmem>>, %arg3: memref<128x512xbf16, #tpu.memory_space<vmem>>, %arg4: memref<1x128xf32, #tpu.memory_space<vmem>>, %arg5: memref<1x128xf32, #tpu.memory_space<vmem>>, %arg6: memref<128x128xbf16, #tpu.memory_space<vmem>>, %arg7: memref<1x128xf32, #tpu.memory_space<vmem>>, %arg8: memref<1x128xf32, #tpu.memory_space<vmem>>, %arg9: memref<1x128xf32, #tpu.memory_space<vmem>>, %arg10: memref<1x128xf32, #tpu.memory_space<vmem>>) attributes {dimension_semantics = [#tpu.dimension_semantics<arbitrary>], iteration_bounds = array<i64: 1>, scalar_prefetch = 0 : i64, scratch_operands = 0 : i64, tpu.core_type = #tpu.core_type<tc>, window_params = [{pipeline_mode = #tpu.pipeline_mode<synchronous>, transform_indices = @transform_0, window_bounds = array<i64: 3, 1, 512>}, {pipeline_mode = #tpu.pipeline_mode<synchronous>, transform_indices = @transform_1, window_bounds = array<i64: 1, 1>}, {pipeline_mode = #tpu.pipeline_mode<synchronous>, transform_indices = @transform_2, window_bounds = array<i64: 128, 512>}, {pipeline_mode = #tpu.pipeline_mode<synchronous>, transform_indices = @transform_3, window_bounds = array<i64: 1, 128>}, {pipeline_mode = #tpu.pipeline_mode<synchronous>, transform_indices = @transform_4, window_bounds = array<i64: 1, 128>}, {pipeline_mode = #tpu.pipeline_mode<synchronous>, transform_indices = @transform_5, window_bounds = array<i64: 128, 128>}, {pipeline_mode = #tpu.pipeline_mode<synchronous>, transform_indices = @transform_6, window_bounds = array<i64: 1, 128>}, {pipeline_mode = #tpu.pipeline_mode<synchronous>, transform_indices = @transform_7, window_bounds = array<i64: 1, 128>}, {pipeline_mode = #tpu.pipeline_mode<synchronous>, transform_indices = @transform_8, window_bounds = array<i64: 1, 128>}, {pipeline_mode = #tpu.pipeline_mode<synchronous>, transform_indices = @transform_9, window_bounds = array<i64: 1, 128>}]} {
    %c0 = arith.constant 0 : index
    %c0_0 = arith.constant 0 : index
    %0 = vector.load %arg2[%c0, %c0_0] : memref<1x1xi32, #tpu.memory_space<vmem>>, vector<1x1xi32>
    %c0_1 = arith.constant 0 : index
    %c0_2 = arith.constant 0 : index
    %1 = vector.load %arg4[%c0_1, %c0_2] : memref<1x128xf32, #tpu.memory_space<vmem>>, vector<1x128xf32>
    %c0_3 = arith.constant 0 : index
    %c0_4 = arith.constant 0 : index
    %2 = vector.load %arg5[%c0_3, %c0_4] : memref<1x128xf32, #tpu.memory_space<vmem>>, vector<1x128xf32>
    %c0_i32 = arith.constant 0 : i32
    %3 = arith.index_cast %c0_i32 : i32 to index
    %c0_5 = arith.constant 0 : index
    %c0_6 = arith.constant 0 : index
    %4 = vector.load %arg1[%3, %c0_5, %c0_6] : memref<3x1x512xf32, #tpu.memory_space<vmem>>, vector<1x1x512xf32>
    %5 = vector.shape_cast %4 : vector<1x1x512xf32> to vector<1x512xf32>
    %6 = arith.truncf %1 : vector<1x128xf32> to vector<1x128xbf16>
    %c0_7 = arith.constant 0 : index
    %c0_8 = arith.constant 0 : index
    %7 = vector.load %arg3[%c0_7, %c0_8] : memref<128x512xbf16, #tpu.memory_space<vmem>>, vector<128x512xbf16>
    %cst = arith.constant dense<0.000000e+00> : vector<1x512xf32>
    %8 = tpu.matmul %6, %7, %cst {dimension_numbers = #tpu.dot_dimension_numbers<[1], [0], [0], [1], [0, 0, 1, 1], [], []>} : vector<1x128xbf16>, vector<128x512xbf16>, vector<1x512xf32> -> vector<1x512xf32>
    %9 = arith.addf %8, %5 : vector<1x512xf32>
    %10 = vector.extract_strided_slice %9 {offsets = [0, 0], sizes = [1, 384], strides = [1, 1]} : vector<1x512xf32> to vector<1x384xf32>
    %11 = arith.negf %10 : vector<1x384xf32>
    %12 = math.exp %11 : vector<1x384xf32>
    %cst_9 = arith.constant 1.000000e+00 : f32
    %13 = vector.broadcast %cst_9 : f32 to vector<1x384xf32>
    %14 = arith.addf %13, %12 : vector<1x384xf32>
    %15 = arith.divf %13, %14 : vector<1x384xf32>
    %16 = vector.extract_strided_slice %15 {offsets = [0, 0], sizes = [1, 128], strides = [1, 1]} : vector<1x384xf32> to vector<1x128xf32>
    %17 = vector.extract_strided_slice %15 {offsets = [0, 128], sizes = [1, 128], strides = [1, 1]} : vector<1x384xf32> to vector<1x128xf32>
    %18 = vector.extract_strided_slice %15 {offsets = [0, 256], sizes = [1, 128], strides = [1, 1]} : vector<1x384xf32> to vector<1x128xf32>
    %19 = vector.extract_strided_slice %9 {offsets = [0, 384], sizes = [1, 128], strides = [1, 1]} : vector<1x512xf32> to vector<1x128xf32>
    %20 = math.tanh %19 : vector<1x128xf32>
    %21 = arith.mulf %17, %2 : vector<1x128xf32>
    %22 = arith.mulf %16, %20 : vector<1x128xf32>
    %23 = arith.addf %21, %22 : vector<1x128xf32>
    %24 = math.tanh %23 : vector<1x128xf32>
    %25 = arith.mulf %18, %24 : vector<1x128xf32>
    %26 = vector.broadcast %c0_i32 : i32 to vector<1x1xi32>
    %27 = arith.cmpi slt, %26, %0 : vector<1x1xi32>
    %28 = vector.shape_cast %27 : vector<1x1xi1> to vector<1x1xi1>
    %29 = vector.broadcast %28 : vector<1x1xi1> to vector<1x128xi1>
    %30 = arith.select %29, %25, %1 : vector<1x128xi1>, vector<1x128xf32>
    %31 = vector.shape_cast %27 : vector<1x1xi1> to vector<1x1xi1>
    %32 = vector.broadcast %31 : vector<1x1xi1> to vector<1x128xi1>
    %33 = arith.select %32, %23, %2 : vector<1x128xi1>, vector<1x128xf32>
    %c1_i32 = arith.constant 1 : i32
    %34 = arith.index_cast %c1_i32 : i32 to index
    %c0_10 = arith.constant 0 : index
    %c0_11 = arith.constant 0 : index
    %35 = vector.load %arg1[%34, %c0_10, %c0_11] : memref<3x1x512xf32, #tpu.memory_space<vmem>>, vector<1x1x512xf32>
    %36 = vector.shape_cast %35 : vector<1x1x512xf32> to vector<1x512xf32>
    %37 = arith.truncf %30 : vector<1x128xf32> to vector<1x128xbf16>
    %c0_12 = arith.constant 0 : index
    %c0_13 = arith.constant 0 : index
    %38 = vector.load %arg3[%c0_12, %c0_13] : memref<128x512xbf16, #tpu.memory_space<vmem>>, vector<128x512xbf16>
    %cst_14 = arith.constant dense<0.000000e+00> : vector<1x512xf32>
    %39 = tpu.matmul %37, %38, %cst_14 {dimension_numbers = #tpu.dot_dimension_numbers<[1], [0], [0], [1], [0, 0, 1, 1], [], []>} : vector<1x128xbf16>, vector<128x512xbf16>, vector<1x512xf32> -> vector<1x512xf32>
    %40 = arith.addf %39, %36 : vector<1x512xf32>
    %41 = vector.extract_strided_slice %40 {offsets = [0, 0], sizes = [1, 384], strides = [1, 1]} : vector<1x512xf32> to vector<1x384xf32>
    %42 = arith.negf %41 : vector<1x384xf32>
    %43 = math.exp %42 : vector<1x384xf32>
    %cst_15 = arith.constant 1.000000e+00 : f32
    %44 = vector.broadcast %cst_15 : f32 to vector<1x384xf32>
    %45 = arith.addf %44, %43 : vector<1x384xf32>
    %46 = arith.divf %44, %45 : vector<1x384xf32>
    %47 = vector.extract_strided_slice %46 {offsets = [0, 0], sizes = [1, 128], strides = [1, 1]} : vector<1x384xf32> to vector<1x128xf32>
    %48 = vector.extract_strided_slice %46 {offsets = [0, 128], sizes = [1, 128], strides = [1, 1]} : vector<1x384xf32> to vector<1x128xf32>
    %49 = vector.extract_strided_slice %46 {offsets = [0, 256], sizes = [1, 128], strides = [1, 1]} : vector<1x384xf32> to vector<1x128xf32>
    %50 = vector.extract_strided_slice %40 {offsets = [0, 384], sizes = [1, 128], strides = [1, 1]} : vector<1x512xf32> to vector<1x128xf32>
    %51 = math.tanh %50 : vector<1x128xf32>
    %52 = arith.mulf %48, %33 : vector<1x128xf32>
    %53 = arith.mulf %47, %51 : vector<1x128xf32>
    %54 = arith.addf %52, %53 : vector<1x128xf32>
    %55 = math.tanh %54 : vector<1x128xf32>
    %56 = arith.mulf %49, %55 : vector<1x128xf32>
    %57 = vector.broadcast %c1_i32 : i32 to vector<1x1xi32>
    %58 = arith.cmpi slt, %57, %0 : vector<1x1xi32>
    %59 = vector.shape_cast %58 : vector<1x1xi1> to vector<1x1xi1>
    %60 = vector.broadcast %59 : vector<1x1xi1> to vector<1x128xi1>
    %61 = arith.select %60, %56, %30 : vector<1x128xi1>, vector<1x128xf32>
    %62 = vector.shape_cast %58 : vector<1x1xi1> to vector<1x1xi1>
    %63 = vector.broadcast %62 : vector<1x1xi1> to vector<1x128xi1>
    %64 = arith.select %63, %54, %33 : vector<1x128xi1>, vector<1x128xf32>
    %c2_i32 = arith.constant 2 : i32
    %65 = arith.index_cast %c2_i32 : i32 to index
    %c0_16 = arith.constant 0 : index
    %c0_17 = arith.constant 0 : index
    %66 = vector.load %arg1[%65, %c0_16, %c0_17] : memref<3x1x512xf32, #tpu.memory_space<vmem>>, vector<1x1x512xf32>
    %67 = vector.shape_cast %66 : vector<1x1x512xf32> to vector<1x512xf32>
    %68 = arith.truncf %61 : vector<1x128xf32> to vector<1x128xbf16>
    %c0_18 = arith.constant 0 : index
    %c0_19 = arith.constant 0 : index
    %69 = vector.load %arg3[%c0_18, %c0_19] : memref<128x512xbf16, #tpu.memory_space<vmem>>, vector<128x512xbf16>
    %cst_20 = arith.constant dense<0.000000e+00> : vector<1x512xf32>
    %70 = tpu.matmul %68, %69, %cst_20 {dimension_numbers = #tpu.dot_dimension_numbers<[1], [0], [0], [1], [0, 0, 1, 1], [], []>} : vector<1x128xbf16>, vector<128x512xbf16>, vector<1x512xf32> -> vector<1x512xf32>
    %71 = arith.addf %70, %67 : vector<1x512xf32>
    %72 = vector.extract_strided_slice %71 {offsets = [0, 0], sizes = [1, 384], strides = [1, 1]} : vector<1x512xf32> to vector<1x384xf32>
    %73 = arith.negf %72 : vector<1x384xf32>
    %74 = math.exp %73 : vector<1x384xf32>
    %cst_21 = arith.constant 1.000000e+00 : f32
    %75 = vector.broadcast %cst_21 : f32 to vector<1x384xf32>
    %76 = arith.addf %75, %74 : vector<1x384xf32>
    %77 = arith.divf %75, %76 : vector<1x384xf32>
    %78 = vector.extract_strided_slice %77 {offsets = [0, 0], sizes = [1, 128], strides = [1, 1]} : vector<1x384xf32> to vector<1x128xf32>
    %79 = vector.extract_strided_slice %77 {offsets = [0, 128], sizes = [1, 128], strides = [1, 1]} : vector<1x384xf32> to vector<1x128xf32>
    %80 = vector.extract_strided_slice %77 {offsets = [0, 256], sizes = [1, 128], strides = [1, 1]} : vector<1x384xf32> to vector<1x128xf32>
    %81 = vector.extract_strided_slice %71 {offsets = [0, 384], sizes = [1, 128], strides = [1, 1]} : vector<1x512xf32> to vector<1x128xf32>
    %82 = math.tanh %81 : vector<1x128xf32>
    %83 = arith.mulf %79, %64 : vector<1x128xf32>
    %84 = arith.mulf %78, %82 : vector<1x128xf32>
    %85 = arith.addf %83, %84 : vector<1x128xf32>
    %86 = math.tanh %85 : vector<1x128xf32>
    %87 = arith.mulf %80, %86 : vector<1x128xf32>
    %88 = vector.broadcast %c2_i32 : i32 to vector<1x1xi32>
    %89 = arith.cmpi slt, %88, %0 : vector<1x1xi32>
    %90 = vector.shape_cast %89 : vector<1x1xi1> to vector<1x1xi1>
    %91 = vector.broadcast %90 : vector<1x1xi1> to vector<1x128xi1>
    %92 = arith.select %91, %87, %61 : vector<1x128xi1>, vector<1x128xf32>
    %93 = vector.shape_cast %89 : vector<1x1xi1> to vector<1x1xi1>
    %94 = vector.broadcast %93 : vector<1x1xi1> to vector<1x128xi1>
    %95 = arith.select %94, %85, %64 : vector<1x128xi1>, vector<1x128xf32>
    %c3_i32 = arith.constant 3 : i32
    %c0_22 = arith.constant 0 : index
    %c0_23 = arith.constant 0 : index
    %96 = vector.load %arg9[%c0_22, %c0_23] : memref<1x128xf32, #tpu.memory_space<vmem>>, vector<1x128xf32>
    tpu.vector_store %arg9[%c0_22, %c0_23], %92 {strides = array<i32>} : memref<1x128xf32, #tpu.memory_space<vmem>>, vector<1x128xf32>,
    %c0_24 = arith.constant 0 : index
    %c0_25 = arith.constant 0 : index
    %97 = vector.load %arg10[%c0_24, %c0_25] : memref<1x128xf32, #tpu.memory_space<vmem>>, vector<1x128xf32>
    tpu.vector_store %arg10[%c0_24, %c0_25], %95 {strides = array<i32>} : memref<1x128xf32, #tpu.memory_space<vmem>>, vector<1x128xf32>,
    %98 = arith.truncf %92 : vector<1x128xf32> to vector<1x128xbf16>
    %c0_26 = arith.constant 0 : index
    %c0_27 = arith.constant 0 : index
    %99 = vector.load %arg6[%c0_26, %c0_27] : memref<128x128xbf16, #tpu.memory_space<vmem>>, vector<128x128xbf16>
    %cst_28 = arith.constant dense<0.000000e+00> : vector<1x128xf32>
    %100 = tpu.matmul %98, %99, %cst_28 {dimension_numbers = #tpu.dot_dimension_numbers<[1], [0], [0], [1], [0, 0, 1, 1], [], []>} : vector<1x128xbf16>, vector<128x128xbf16>, vector<1x128xf32> -> vector<1x128xf32>
    %c0_29 = arith.constant 0 : index
    %c0_30 = arith.constant 0 : index
    %101 = vector.load %arg7[%c0_29, %c0_30] : memref<1x128xf32, #tpu.memory_space<vmem>>, vector<1x128xf32>
    %102 = arith.addf %100, %101 : vector<1x128xf32>
    %cst_31 = arith.constant dense<0xFF800000> : vector<1xf32>
    %103 = vector.multi_reduction <maximumf>, %102, %cst_31 [1] : vector<1x128xf32> to vector<1xf32>
    %104 = vector.shape_cast %103 : vector<1xf32> to vector<1x1xf32>
    %105 = vector.broadcast %104 : vector<1x1xf32> to vector<1x128xf32>
    %106 = arith.subf %102, %105 : vector<1x128xf32>
    %107 = math.exp %106 : vector<1x128xf32>
    %cst_32 = arith.constant dense<0.000000e+00> : vector<1xf32>
    %108 = vector.multi_reduction <add>, %107, %cst_32 [1] : vector<1x128xf32> to vector<1xf32>
    %109 = vector.shape_cast %108 : vector<1xf32> to vector<1x1xf32>
    %110 = math.log %109 : vector<1x1xf32>
    %111 = vector.broadcast %110 : vector<1x1xf32> to vector<1x128xf32>
    %112 = arith.subf %106, %111 : vector<1x128xf32>
    %c0_33 = arith.constant 0 : index
    %c0_34 = arith.constant 0 : index
    %113 = vector.load %arg8[%c0_33, %c0_34] : memref<1x128xf32, #tpu.memory_space<vmem>>, vector<1x128xf32>
    tpu.vector_store %arg8[%c0_33, %c0_34], %112 {strides = array<i32>} : memref<1x128xf32, #tpu.memory_space<vmem>>, vector<1x128xf32>,
    return
  }
  func.func @transform_0(%arg0: i32) -> (i32, i32, i32) {
    %c0_i32 = arith.constant 0 : i32
    %c0_i32_0 = arith.constant 0 : i32
    %c0_i32_1 = arith.constant 0 : i32
    %c0_i32_2 = arith.constant 0 : i32
    return %c0_i32, %c0_i32_0, %c0_i32_1 : i32, i32, i32
  }
  func.func @transform_1(%arg0: i32) -> (i32, i32) {
    %c0_i32 = arith.constant 0 : i32
    %c0_i32_0 = arith.constant 0 : i32
    %c0_i32_1 = arith.constant 0 : i32
    return %c0_i32, %c0_i32_0 : i32, i32
  }
  func.func @transform_2(%arg0: i32) -> (i32, i32) {
    %c0_i32 = arith.constant 0 : i32
    %c0_i32_0 = arith.constant 0 : i32
    %c0_i32_1 = arith.constant 0 : i32
    return %c0_i32, %c0_i32_0 : i32, i32
  }
  func.func @transform_3(%arg0: i32) -> (i32, i32) {
    %c0_i32 = arith.constant 0 : i32
    %c0_i32_0 = arith.constant 0 : i32
    %c0_i32_1 = arith.constant 0 : i32
    return %c0_i32, %c0_i32_0 : i32, i32
  }
  func.func @transform_4(%arg0: i32) -> (i32, i32) {
    %c0_i32 = arith.constant 0 : i32
    %c0_i32_0 = arith.constant 0 : i32
    %c0_i32_1 = arith.constant 0 : i32
    return %c0_i32, %c0_i32_0 : i32, i32
  }
  func.func @transform_5(%arg0: i32) -> (i32, i32) {
    %c0_i32 = arith.constant 0 : i32
    %c0_i32_0 = arith.constant 0 : i32
    %c0_i32_1 = arith.constant 0 : i32
    return %c0_i32, %c0_i32_0 : i32, i32
  }
  func.func @transform_6(%arg0: i32) -> (i32, i32) {
    %c0_i32 = arith.constant 0 : i32
    %c0_i32_0 = arith.constant 0 : i32
    %c0_i32_1 = arith.constant 0 : i32
    return %c0_i32, %c0_i32_0 : i32, i32
  }
  func.func @transform_7(%arg0: i32) -> (i32, i32) {
    %c0_i32 = arith.constant 0 : i32
    %c0_i32_0 = arith.constant 0 : i32
    %c0_i32_1 = arith.constant 0 : i32
    return %c0_i32, %c0_i32_0 : i32, i32
  }
  func.func @transform_8(%arg0: i32) -> (i32, i32) {
    %c0_i32 = arith.constant 0 : i32
    %c0_i32_0 = arith.constant 0 : i32
    %c0_i32_1 = arith.constant 0 : i32
    return %c0_i32, %c0_i32_0 : i32, i32
  }
  func.func @transform_9(%arg0: i32) -> (i32, i32) {
    %c0_i32 = arith.constant 0 : i32
    %c0_i32_0 = arith.constant 0 : i32
    %c0_i32_1 = arith.constant 0 : i32
    return %c0_i32, %c0_i32_0 : i32, i32
  }
}

</mosaic_0001>

<bundles_post_ra>
// kernel: tpu_custom_call.1
= control target key start
LH: loop header
LB: loop body
LE: loop exit
PB: predicated region body
PF: predicated region fallthrough
CT: control target
= control target key end

     0   :  { %s1570_s0 = inlined_call_operand.hbm [shape: f32[3,1,512], index: 0, kind: input, shape index: {}]   ;;  %s1571_s1 = inlined_call_operand.<no memory space> [shape: s32[1,1], index: 1, kind: input, shape index: {}]   ;;  %s1572_s2 = inlined_call_operand.hbm [shape: bf16[128,512], index: 2, kind: input, shape index: {}]   ;;  %s1573_s3 = inlined_call_operand.vmem [shape: f32[1,128], index: 3, kind: input, shape index: {}]   ;;  %s1574_s4 = inlined_call_operand.vmem [shape: f32[1,128], index: 4, kind: input, shape index: {}]   ;;  %s1575_s5 = inlined_call_operand.hbm [shape: bf16[128,128], index: 5, kind: input, shape index: {}]   ;;  %s1576_s6 = inlined_call_operand.vmem [shape: f32[1,128], index: 6, kind: input, shape index: {}]   ;;  %s1577_s7 = inlined_call_operand.hbm [shape: f32[1,128], index: 7, kind: output, shape index: {0}]   ;;  %s1578_s8 = inlined_call_operand.hbm [shape: f32[1,128], index: 8, kind: output, shape index: {1}]   ;;  %s1579_s9 = inlined_call_operand.hbm [shape: f32[1,128], index: 9, kind: output, shape index: {2}]  }
   0x1   :  { %v15_v0 = vstv %s1571_s1 }
   0x2   :  { %16 = vst [vmem:[#allocation2] sm:$0x1] %v15_v0 }
   0x3   :  { %17 = vsyncpa [#allocation4], 0 }
   0x4   :  { %18 = vsyncpa [#allocation7], 0 }
   0x5   :  { %19 = vsyncpa [#allocation5], 0 }
   0x6   :  { %20 = vsyncpa [#allocation11], 0  ;;  %s1201_s11 = smov [#allocation6]   ;;  %s1061_s15 = scalar_lea.hbm %s1572_s2, 4096 }
   0x7   :  { %s40_s12 = sshll.u32 %s1201_s11, 4  ;;  %p1062_p0 = scmp.ne.s32.totalorder %s1572_s2, %s1061_s15  ;;  %s41_s12 = int_to_ptr.vmem [resolvable:$true] %s40_s12 }
   0x8   :  { %p1065_p1 = scmp.lt.u32.totalorder %s1061_s15, %s1572_s2 }
   0xa   :  { %p1067_p2 = pnand %p1065_p1, %p1062_p0 }
   0xc   :  { %1070 = shalt.err (!%p1067_p2)
}
   0xd   :  { %s1071_s1 = scalar_lea.vmem %s41_s12, 4096  ;;  %p1076_p4 = scmp.lt.s32.totalorder %s41_s12, %s41_s12 }
   0xe   :  { %p1072_p3 = scmp.ne.s32.totalorder %s41_s12, %s1071_s1  ;;  %p1077_p5 = scmp.lt.s32.totalorder %s1071_s1, %s1071_s1 }
  0x10   :  { %p1078_p6 = por %p1077_p5, %p1076_p4 }
  0x12   :  { %p1079_p7 = pnand %p1078_p6, %p1072_p3 }
  0x14   :  { %1082 = shalt.err (!%p1079_p7)
}
  0x15   :  { %s1202_s20 = smov 256   ;;  %s1203_s21 = smov 16  }
  0x16   :  { %46 = dma.hbm_to_vmem [thread:$0]  %s1572_s2, 4096, %s41_s12, [#allocation7], %s1202_s20, %s1202_s20, %s1203_s21  }
  0x17   :  { %s1204_s24 = smov [#allocation3]   ;;  %s1083_s28 = scalar_lea.hbm %s1570_s0, 192 }
  0x18   :  { %s26_s25 = sshll.u32 %s1204_s24, 4  ;;  %p1084_p8 = scmp.ne.s32.totalorder %s1570_s0, %s1083_s28  ;;  %s27_s25 = int_to_ptr.vmem [resolvable:$true] %s26_s25 }
  0x19   :  { %p1087_p9 = scmp.lt.u32.totalorder %s1083_s28, %s1570_s0 }
  0x1b   :  { %p1089_p10 = pnand %p1087_p9, %p1084_p8 }
  0x1d   :  { %1092 = shalt.err (!%p1089_p10)
}
  0x1e   :  { %s1093_s13 = scalar_lea.vmem %s27_s25, 192  ;;  %p1098_p12 = scmp.lt.s32.totalorder %s27_s25, %s27_s25 }
  0x1f   :  { %p1094_p11 = scmp.ne.s32.totalorder %s27_s25, %s1093_s13  ;;  %p1099_p13 = scmp.lt.s32.totalorder %s1093_s13, %s1093_s13 }
  0x21   :  { %p1100_p0 = por %p1099_p13, %p1098_p12 }
  0x23   :  { %p1101_p1 = pnand %p1100_p0, %p1094_p11 }
  0x25   :  { %1104 = shalt.err (!%p1101_p1)
}
  0x26   :  { %s1205_s2 = smov 64   ;;  %s1206_s12 = smov 4  }
  0x27   :  { %32 = dma.hbm_to_vmem [thread:$0]  %s1570_s0, 192, %s27_s25, [#allocation4], %s1205_s2, %s1205_s2, %s1206_s12  }
  0x28   :  { %s1207_s16 = smov [#allocation8]   ;;  %s1105_s1 = scalar_lea.hbm %s1575_s5, 1024 }
  0x29   :  { %s56_s17 = sshll.u32 %s1207_s16, 4  ;;  %p1106_p2 = scmp.ne.s32.totalorder %s1575_s5, %s1105_s1  ;;  %s57_s17 = int_to_ptr.vmem [resolvable:$true] %s56_s17 }
  0x2a   :  { %p1109_p3 = scmp.lt.u32.totalorder %s1105_s1, %s1575_s5 }
  0x2c   :  { %p1111_p4 = pnand %p1109_p3, %p1106_p2 }
  0x2e   :  { %1114 = shalt.err (!%p1111_p4)
}
  0x2f   :  { %s1115_s24 = scalar_lea.vmem %s57_s17, 1024  ;;  %p1120_p6 = scmp.lt.s32.totalorder %s57_s17, %s57_s17 }
  0x30   :  { %p1116_p5 = scmp.ne.s32.totalorder %s57_s17, %s1115_s24  ;;  %p1121_p7 = scmp.lt.s32.totalorder %s1115_s24, %s1115_s24 }
  0x32   :  { %p1122_p8 = por %p1121_p7, %p1120_p6 }
  0x34   :  { %p1123_p9 = pnand %p1122_p8, %p1116_p5 }
  0x36   :  { %1126 = shalt.err (!%p1123_p9)
}
  0x37   :  { %62 = dma.hbm_to_vmem [thread:$0]  %s1575_s5, 1024, %s57_s17, [#allocation7], %s1205_s2, %s1205_s2, %s1206_s12  }
  0x38   :  { %1193 = dma.done.wait [#allocation4], 192  }
  0x39   :  { %1194 = vsyncadd [#allocation4], 4294967104 }
  0x3a   :  { %1195 = dma.done.wait [#allocation7], 5120  }
  0x3b   :  { %1196 = vsyncadd [#allocation7], 4294962176  ;;  %v1208_v1 = vmov 0   ;;  %v1307_v2 = vld [vmem:[#allocation6 + $0x4] ss:$16 sps:$4 sm:$0xff]   ;;  %v273_v39 = vlaneseq  ;;  %vm1210_vm5 = vmmov 0  }
  0x3c   :  { %325 = vmatprep.mubr.bf16.mxu0 %v1208_v1  ;;  %366 = vmatprep.mubr.bf16.mxu1 %v1208_v1  ;;  %v1309_v3 = vld [vmem:[#allocation6] ss:$16 sps:$4 sm:$0xff]   ;;  %v1312_v4 = vld [vmem:[#allocation6 + $0x24] ss:$16 sps:$4 sm:$0xff]   ;;  %v1320_v7 = vld [vmem:[#allocation6 + $0xc] ss:$16 sps:$4 sm:$0xff]  }
  0x3d   :  { %951 = vset.pattern.permute.xlu0 %v1208_v1  ;;  %952 = vset.pattern.permute.xlu1 %v1208_v1  ;;  %v1315_v5 = vld [vmem:[#allocation6 + $0x20] ss:$16 sps:$4 sm:$0xff]   ;;  %v1318_v6 = vld [vmem:[#allocation6 + $0x44] ss:$16 sps:$4 sm:$0xff]   ;;  %v1322_v8 = vld [vmem:[#allocation6 + $0x8] ss:$16 sps:$4 sm:$0xff]  }
  0x3e   :  { %293 = vmatprep.subr.bf16.mxu0 %v1307_v2  ;;  %v1325_v9 = vld [vmem:[#allocation6 + $0x40] ss:$16 sps:$4 sm:$0xff]   ;;  %334 = vmatprep.subr.bf16.mxu1 %v1320_v7  ;;  %v1329_v10 = vld [vmem:[#allocation6 + $0x64] ss:$16 sps:$4 sm:$0xff]   ;;  %v1332_v11 = vld [vmem:[#allocation6 + $0x2c] ss:$16 sps:$4 sm:$0xff]  }
  0x3f   :  { %294 = vmatpush1.bf16.msra.mxu0 %v1309_v3  ;;  %335 = vmatpush1.bf16.msra.mxu1 %v1322_v8  ;;  %v1334_v12 = vld [vmem:[#allocation6 + $0x28] ss:$16 sps:$4 sm:$0xff]   ;;  %v1338_v13 = vld [vmem:[#allocation6 + $0x60] ss:$16 sps:$4 sm:$0xff]   ;;  %v1340_v14 = vld [vmem:[#allocation6 + $0x84] ss:$16 sps:$4 sm:$0xff]  }
  0x40   :  { %295 = vmatprep.subr.bf16.mxu0 %v1312_v4  ;;  %336 = vmatprep.subr.bf16.mxu1 %v1332_v11  ;;  %v1342_v15 = vld [vmem:[#allocation6 + $0x4c] ss:$16 sps:$4 sm:$0xff]   ;;  %v1346_v16 = vld [vmem:[#allocation6 + $0x48] ss:$16 sps:$4 sm:$0xff]   ;;  %v1352_v18 = vld [vmem:[#allocation6 + $0x80] ss:$16 sps:$4 sm:$0xff]  }
  0x41   :  { %v1349_v17 = vld [vmem:[#allocation6 + $0x6c] ss:$16 sps:$4 sm:$0xff]   ;;  %v1355_v19 = vld [vmem:[#allocation6 + $0xa4] ss:$16 sps:$4 sm:$0xff]   ;;  %v1358_v20 = vld [vmem:[#allocation6 + $0x68] ss:$16 sps:$4 sm:$0xff]  }
  0x42   :  { %v1361_v21 = vld [vmem:[#allocation6 + $0x8c] ss:$16 sps:$4 sm:$0xff]   ;;  %v1363_v22 = vld [vmem:[#allocation6 + $0xa0] ss:$16 sps:$4 sm:$0xff]   ;;  %v1366_v23 = vld [vmem:[#allocation6 + $0xc4] ss:$16 sps:$4 sm:$0xff]  }
  0x43   :  { %296 = vmatpush1.bf16.msra.mxu0 %v1315_v5  ;;  %337 = vmatpush1.bf16.msra.mxu1 %v1334_v12  ;;  %v1370_v24 = vld [vmem:[#allocation6 + $0x88] ss:$16 sps:$4 sm:$0xff]   ;;  %v1372_v25 = vld [vmem:[#allocation6 + $0xc0] ss:$16 sps:$4 sm:$0xff]   ;;  %v1375_v26 = vld [vmem:[#allocation6 + $0xac] ss:$16 sps:$4 sm:$0xff]  }
  0x44   :  { %297 = vmatprep.subr.bf16.mxu0 %v1318_v6  ;;  %338 = vmatprep.subr.bf16.mxu1 %v1342_v15  ;;  %v1377_v27 = vld [vmem:[#allocation2] sm:$0x1]  ;;  %v1379_v28 = vld [vmem:[#allocation6 + $0xe4] ss:$16 sps:$4 sm:$0xff]   ;;  %v1381_v29 = vld [vmem:[#allocation6 + $0xa8] ss:$16 sps:$4 sm:$0xff]  }
  0x45   :  { %vm399_vm0 = vcmp.gt.s32.totalorder %v1377_v27, 0  ;;  %vm541_vm1 = vcmp.gt.s32.totalorder %v1377_v27, 1  ;;  %v1386_v30 = vld [vmem:[#allocation6 + $0xcc] ss:$16 sps:$4 sm:$0xff]   ;;  %v1392_v33 = vld [vmem:[#allocation6 + $0xe0] ss:$16 sps:$4 sm:$0xff]  }
  0x46   :  { %v400_v31 = vsel %vm399_vm0, 1, %v1208_v1  ;;  %v542_v32 = vsel %vm541_vm1, 1, %v1208_v1  ;;  %v1397_v34 = vld [vmem:[%s1573_s3] sm:$0x1]  ;;  %v1403_v35 = vld [vmem:[#allocation6 + $0xc8] ss:$16 sps:$4 sm:$0xff]  }
  0x47   :  { %298 = vmatpush1.bf16.msra.mxu0 %v1325_v9  ;;  %339 = vmatpush1.bf16.msra.mxu1 %v1346_v16  ;;  %v1406_v36 = vld [vmem:[#allocation6 + $0xec] ss:$16 sps:$4 sm:$0xff]   ;;  %v79_v37 = vpack.c.bf16 %v1397_v34, %v1397_v34  ;;  %v1412_v38 = vld [vmem:[#allocation6 + $0xe8] ss:$16 sps:$4 sm:$0xff]   ;;  %v274_v40 = vshrl.u32 %v273_v39, 7  ;;  %vm683_vm3 = vcmp.gt.s32.totalorder %v1377_v27, 2 }
  0x48   :  { %299 = vmatprep.subr.bf16.mxu0 %v1329_v10  ;;  %340 = vmatprep.subr.bf16.mxu1 %v1349_v17  ;;  %v78_v42 = vld [vmem:[#allocation3] sm:$0xf]  ;;  %vm803_vm7 = vcmask 1040384   ;;  %s1211_s29 = smov [#allocation10]  }
  0x49   :  { %402 = vperm.xlu0 %951, %v400_v31   ;;  %v1452_v41 = vsub.s32 0, %v274_v40  ;;  %v1454_v43 = vsub.s32 1, %v274_v40  ;;  %v1458_v46 = vsub.s32 2, %v274_v40  ;;  %v1461_v56 = vsub.s32 3, %v274_v40  ;;  %s833_s30 = sshll.u32 %s1211_s29, 4  ;;  %s834_s30 = int_to_ptr.vmem [resolvable:$true] %s833_s30 }
  0x4a   :  { %s1127_s10 = scalar_lea.vmem %s834_s30, 16  ;;  %p1132_p11 = scmp.lt.s32.totalorder %s834_s30, %s834_s30 }
  0x4b   :  { %300 = vmatpush1.bf16.msra.mxu0 %v1338_v13  ;;  %341 = vmatpush1.bf16.msra.mxu1 %v1358_v20  ;;  %v276_v44 = vrot.slane %v78_v42, %v1452_v41  ;;  %v280_v45 = vrot.slane %v78_v42, %v1454_v43  ;;  %v284_v54 = vrot.slane %v78_v42, %v1458_v46  ;;  %p1128_p10 = scmp.ne.s32.totalorder %s834_s30, %s1127_s10 }
  0x4c   :  { %301 = vmatprep.subr.bf16.mxu0 %v1340_v14  ;;  %342 = vmatprep.subr.bf16.mxu1 %v1361_v21  ;;  %v288_v61 = vrot.slane %v78_v42, %v1461_v56 }
  0x4d   :  { %544 = vperm.xlu0 %951, %v542_v32  }
  0x4f   :  { %302 = vmatpush1.bf16.msra.mxu0 %v1352_v18  ;;  %343 = vmatpush1.bf16.msra.mxu1 %v1370_v24 }
  0x50   :  { %303 = vmatprep.subr.bf16.mxu0 %v1355_v19  ;;  %344 = vmatprep.subr.bf16.mxu1 %v1375_v26 }
  0x53   :  { %304 = vmatpush1.bf16.msra.mxu0 %v1363_v22  ;;  %345 = vmatpush1.bf16.msra.mxu1 %v1381_v29 }
  0x54   :  { %305 = vmatprep.subr.bf16.mxu0 %v1366_v23  ;;  %346 = vmatprep.subr.bf16.mxu1 %v1386_v30 }
  0x57   :  { %306 = vmatpush1.bf16.msra.mxu0 %v1372_v25  ;;  %347 = vmatpush1.bf16.msra.mxu1 %v1403_v35 }
  0x58   :  { %307 = vmatprep.subr.bf16.mxu0 %v1379_v28  ;;  %348 = vmatprep.subr.bf16.mxu1 %v1406_v36 }
  0x5b   :  { %308 = vmatpush1.bf16.msra.mxu0 %v1392_v33  ;;  %349 = vmatpush1.bf16.msra.mxu1 %v1412_v38 }
  0x5c   :  { %435 = vmatprep.subr.bf16.mxu0 %v1307_v2  ;;  %476 = vmatprep.subr.bf16.mxu1 %v1320_v7 }
  0x5e   :  { %326 = vmatmul.mubr.bf16.vlgmr.msra.gmra.mrb[0].mxu0 %v79_v37  ;;  %367 = vmatmul.mubr.bf16.vlgmr.msra.gmra.mrb[0].mxu1 %v79_v37 }
  0x5f   :  { %436 = vmatpush1.bf16.msra.mxu0 %v1309_v3  ;;  %467 = vmatprep.mubr.bf16.mxu0 %v1208_v1 }
  0x60   :  { %437 = vmatprep.subr.bf16.mxu0 %v1312_v4  ;;  %477 = vmatpush1.bf16.msra.mxu1 %v1322_v8 }
  0x61   :  { %478 = vmatprep.subr.bf16.mxu1 %v1332_v11  ;;  %508 = vmatprep.mubr.bf16.mxu1 %v1208_v1 }
  0x63   :  { %438 = vmatpush1.bf16.msra.mxu0 %v1315_v5 }
  0x64   :  { %439 = vmatprep.subr.bf16.mxu0 %v1318_v6  ;;  %479 = vmatpush1.bf16.msra.mxu1 %v1334_v12 }
  0x65   :  { %480 = vmatprep.subr.bf16.mxu1 %v1342_v15 }
  0x67   :  { %440 = vmatpush1.bf16.msra.mxu0 %v1325_v9 }
  0x68   :  { %441 = vmatprep.subr.bf16.mxu0 %v1329_v10  ;;  %481 = vmatpush1.bf16.msra.mxu1 %v1346_v16 }
  0x69   :  { %482 = vmatprep.subr.bf16.mxu1 %v1349_v17 }
  0x6b   :  { %442 = vmatpush1.bf16.msra.mxu0 %v1338_v13 }
  0x6c   :  { %443 = vmatprep.subr.bf16.mxu0 %v1340_v14  ;;  %483 = vmatpush1.bf16.msra.mxu1 %v1358_v20 }
  0x6d   :  { %484 = vmatprep.subr.bf16.mxu1 %v1361_v21 }
  0x6f   :  { %444 = vmatpush1.bf16.msra.mxu0 %v1352_v18 }
  0x70   :  { %445 = vmatprep.subr.bf16.mxu0 %v1355_v19  ;;  %485 = vmatpush1.bf16.msra.mxu1 %v1370_v24 }
  0x71   :  { %486 = vmatprep.subr.bf16.mxu1 %v1375_v26 }
  0x73   :  { %446 = vmatpush1.bf16.msra.mxu0 %v1363_v22 }
  0x74   :  { %447 = vmatprep.subr.bf16.mxu0 %v1366_v23  ;;  %487 = vmatpush1.bf16.msra.mxu1 %v1381_v29 }
  0x75   :  { %488 = vmatprep.subr.bf16.mxu1 %v1386_v30 }
  0x77   :  { %448 = vmatpush1.bf16.msra.mxu0 %v1372_v25 }
  0x78   :  { %449 = vmatprep.subr.bf16.mxu0 %v1379_v28  ;;  %489 = vmatpush1.bf16.msra.mxu1 %v1403_v35 }
  0x79   :  { %490 = vmatprep.subr.bf16.mxu1 %v1406_v36 }
  0x7b   :  { %450 = vmatpush1.bf16.msra.mxu0 %v1392_v33 }
  0x7c   :  { %577 = vmatprep.subr.bf16.mxu0 %v1307_v2  ;;  %491 = vmatpush1.bf16.msra.mxu1 %v1412_v38 }
  0x7d   :  { %618 = vmatprep.subr.bf16.mxu1 %v1320_v7 }
  0xc8   :  { %v403_v37 = vpop.permute.xlu0 %402 }
  0xc9   :  { %v407_v42 = vrot.slane %v403_v37, %v1452_v41  ;;  %v1002_v37 = vld [vmem:[#allocation8 + $0x8] sm:$0xff]  }
  0xcb   :  { %vm408_vm2 = vcmp.eq.s32.totalorder %v407_v42, 1  ;;  %v1006_v42 = vld [vmem:[#allocation8 + $0x28] sm:$0xff]  }
 0x131   :  { %v327_v47 = vpop.f32.mrb[0].mxu0  ;;  %v368_v57 = vpop.f32.mrb[0].mxu1 }
 0x132   :  { %v328_v48 = vadd.f32 %v327_v47, %v276_v44  ;;  %v329_v49 = vpop.f32.mrb[1].mxu0  ;;  %v370_v58 = vpop.f32.mrb[1].mxu1  ;;  %v369_v59 = vadd.f32 %v368_v57, %v284_v54  ;;  %v77_v44 = vld [vmem:[%s1574_s4] sm:$0x1] }
 0x133   :  { %v330_v50 = vadd.f32 %v329_v49, %v280_v45  ;;  %v331_v51 = vpop.f32.mrb[2].mxu0  ;;  %v372_v60 = vpop.f32.mrb[2].mxu1  ;;  %v371_v0 = vadd.f32 %v370_v58, %v288_v61 }
 0x134   :  { %v892_v52 = vmul.f32 -1.442695, %v328_v48  ;;  %v332_v53 = vpop.f32.mrb[3].mxu0  ;;  %v373_v62 = vpop.f32.mrb[3].mxu1  ;;  %v894_v63 = vmul.f32 -1.442695, %v369_v59 }
 0x135   :  { %v893_v55 = vmul.f32 -1.442695, %v330_v50 }
 0x136   :  { %1009 = vpow2.f32 %v892_v52 }
 0x137   :  { %1011 = vpow2.f32 %v893_v55 }
 0x138   :  { %1013 = vpow2.f32 %v894_v63 }
 0x139   :  { %1015 = vtanh.f32 %v371_v0 }
 0x140   :  { %v1010_v2 = vpop.eup %1009 }
 0x141   :  { %v1012_v7 = vpop.eup %1011  ;;  %v384_v31 = vadd.f32 1.0, %v1010_v2 }
 0x142   :  { %v385_v32 = vadd.f32 1.0, %v1012_v7  ;;  %v1014_v39 = vpop.eup %1013 }
 0x143   :  { %1017 = vrcp.f32 %v384_v31  ;;  %v1016_v40 = vpop.eup %1015  ;;  %v386_v47 = vadd.f32 1.0, %v1014_v39  ;;  %v1001_v31 = vld [vmem:[#allocation8] sm:$0xff]   ;;  %v1003_v39 = vld [vmem:[#allocation8 + $0x10] sm:$0xff]  }
 0x144   :  { %1019 = vrcp.f32 %v385_v32  ;;  %v1209_v32 = vmov 0.0  }
 0x145   :  { %1021 = vrcp.f32 %v386_v47  ;;  %v1008_v47 = vld [vmem:[#allocation8 + $0x38] sm:$0xff]  }
 0x14d   :  { %v1018_v45 = vpop.eup %1017 }
 0x14e   :  { %v1020_v48 = vpop.eup %1019  ;;  %v395_v49 = vmul.f32 %v1018_v45, %v1016_v40  ;;  %v1004_v40 = vld [vmem:[#allocation8 + $0x18] sm:$0xff]   ;;  %v1007_v45 = vld [vmem:[#allocation8 + $0x30] sm:$0xff]  }
 0x14f   :  { %v394_v50 = vmul.f32 %v1020_v48, %v77_v44  ;;  %v1022_v53 = vpop.eup %1021  ;;  %v554_v48 = vld [vmem:[#allocation3 + $0x8] sm:$0xf] }
 0x151   :  { %v396_v51 = vadd.f32 %v395_v49, %v394_v50  ;;  %v560_v49 = vrot.slane %v554_v48, %v1452_v41  ;;  %v564_v50 = vrot.slane %v554_v48, %v1454_v43 }
 0x153   :  { %1023 = vtanh.f32 %v396_v51  ;;  %v1468_v52 = vsel %vm408_vm2, %v396_v51, %v77_v44  ;;  %v1005_v44 = vld [vmem:[#allocation8 + $0x20] sm:$0xff]  }
 0x15d   :  { %v1024_v54 = vpop.eup %1023 }
 0x15e   :  { %v398_v55 = vmul.f32 %v1024_v54, %v1022_v53 }
 0x160   :  { %v1471_v57 = vsel %vm408_vm2, %v398_v55, %v1397_v34 }
 0x161   :  { %v413_v58 = vpack.c.bf16 %v1471_v57, %v1471_v57 }
 0x163   :  { %468 = vmatmul.mubr.bf16.vlgmr.msra.gmra.mrb[4].mxu0 %v413_v58  ;;  %509 = vmatmul.mubr.bf16.vlgmr.msra.gmra.mrb[4].mxu1 %v413_v58 }
 0x164   :  { %578 = vmatpush1.bf16.msra.mxu0 %v1309_v3  ;;  %619 = vmatpush1.bf16.msra.mxu1 %v1322_v8  ;;  %v684_v3 = vsel %vm683_vm3, 1, %v1208_v1 }
 0x165   :  { %579 = vmatprep.subr.bf16.mxu0 %v1312_v4  ;;  %620 = vmatprep.subr.bf16.mxu1 %v1332_v11  ;;  %v412_v4 = vld [vmem:[#allocation3 + $0x4] sm:$0xf] }
 0x166   :  { %609 = vmatprep.mubr.bf16.mxu0 %v1208_v1  ;;  %650 = vmatprep.mubr.bf16.mxu1 %v1208_v1  ;;  %v426_v1 = vrot.slane %v412_v4, %v1458_v46 }
 0x167   :  { %686 = vperm.xlu1 %952, %v684_v3  }
 0x168   :  { %580 = vmatpush1.bf16.msra.mxu0 %v1315_v5  ;;  %621 = vmatpush1.bf16.msra.mxu1 %v1334_v12  ;;  %v418_v5 = vrot.slane %v412_v4, %v1452_v41 }
 0x169   :  { %581 = vmatprep.subr.bf16.mxu0 %v1318_v6  ;;  %622 = vmatprep.subr.bf16.mxu1 %v1342_v15  ;;  %v422_v6 = vrot.slane %v412_v4, %v1454_v43 }
 0x16c   :  { %582 = vmatpush1.bf16.msra.mxu0 %v1325_v9  ;;  %623 = vmatpush1.bf16.msra.mxu1 %v1346_v16 }
 0x16d   :  { %583 = vmatprep.subr.bf16.mxu0 %v1329_v10  ;;  %624 = vmatprep.subr.bf16.mxu1 %v1349_v17 }
 0x170   :  { %584 = vmatpush1.bf16.msra.mxu0 %v1338_v13  ;;  %625 = vmatpush1.bf16.msra.mxu1 %v1358_v20  ;;  %v430_v20 = vrot.slane %v412_v4, %v1461_v56 }
 0x171   :  { %585 = vmatprep.subr.bf16.mxu0 %v1340_v14  ;;  %626 = vmatprep.subr.bf16.mxu1 %v1361_v21 }
 0x174   :  { %586 = vmatpush1.bf16.msra.mxu0 %v1352_v18  ;;  %627 = vmatpush1.bf16.msra.mxu1 %v1370_v24 }
 0x175   :  { %587 = vmatprep.subr.bf16.mxu0 %v1355_v19  ;;  %628 = vmatprep.subr.bf16.mxu1 %v1375_v26 }
 0x178   :  { %588 = vmatpush1.bf16.msra.mxu0 %v1363_v22  ;;  %629 = vmatpush1.bf16.msra.mxu1 %v1381_v29 }
 0x179   :  { %589 = vmatprep.subr.bf16.mxu0 %v1366_v23  ;;  %630 = vmatprep.subr.bf16.mxu1 %v1386_v30  ;;  %v545_v30 = vpop.permute.xlu0 %544 }
 0x17c   :  { %590 = vmatpush1.bf16.msra.mxu0 %v1372_v25  ;;  %631 = vmatpush1.bf16.msra.mxu1 %v1403_v35 }
 0x17d   :  { %591 = vmatprep.subr.bf16.mxu0 %v1379_v28  ;;  %632 = vmatprep.subr.bf16.mxu1 %v1406_v36  ;;  %v549_v36 = vrot.slane %v545_v30, %v1452_v41 }
 0x17f   :  { %vm550_vm4 = vcmp.eq.s32.totalorder %v549_v36, 1 }
 0x180   :  { %592 = vmatpush1.bf16.msra.mxu0 %v1392_v33  ;;  %633 = vmatpush1.bf16.msra.mxu1 %v1412_v38 }
 0x181   :  { %918 = vmatprep.subr.bf16.mxu0 %v1209_v32 }
 0x236   :  { %v469_v8 = vpop.f32.mrb[4].mxu0  ;;  %v510_v9 = vpop.f32.mrb[4].mxu1 }
 0x237   :  { %v470_v10 = vadd.f32 %v469_v8, %v418_v5  ;;  %v471_v11 = vpop.f32.mrb[5].mxu0  ;;  %v512_v12 = vpop.f32.mrb[5].mxu1  ;;  %v511_v21 = vadd.f32 %v510_v9, %v426_v1  ;;  %v568_v9 = vrot.slane %v554_v48, %v1458_v46 }
 0x238   :  { %v472_v13 = vadd.f32 %v471_v11, %v422_v6  ;;  %v473_v14 = vpop.f32.mrb[6].mxu0  ;;  %v514_v15 = vpop.f32.mrb[6].mxu1  ;;  %v513_v22 = vadd.f32 %v512_v12, %v430_v20 }
 0x239   :  { %v895_v16 = vmul.f32 -1.442695, %v470_v10  ;;  %v474_v17 = vpop.f32.mrb[7].mxu0  ;;  %v515_v18 = vpop.f32.mrb[7].mxu1  ;;  %v897_v23 = vmul.f32 -1.442695, %v511_v21  ;;  %v572_v10 = vrot.slane %v554_v48, %v1461_v56 }
 0x23a   :  { %v896_v19 = vmul.f32 -1.442695, %v472_v13  ;;  %v687_v17 = vpop.permute.xlu1 %686 }
 0x23b   :  { %1025 = vpow2.f32 %v895_v16  ;;  %v691_v46 = vrot.slane %v687_v17, %v1452_v41  ;;  %v714_v41 = vld [vmem:[%s1576_s6] sm:$0x1]  ;;  %s1131_s6 = scalar_lea.vmem %s834_s30, 32 }
 0x23c   :  { %1027 = vpow2.f32 %v896_v19  ;;  %p1133_p12 = scmp.lt.s32.totalorder %s1131_s6, %s1127_s10 }
 0x23d   :  { %1029 = vtanh.f32 %v513_v22  ;;  %vm692_vm6 = vcmp.eq.s32.totalorder %v691_v46, 1 }
 0x23e   :  { %1031 = vpow2.f32 %v897_v23  ;;  %p1134_p13 = por %p1133_p12, %p1132_p11 }
 0x240   :  { %p1135_p0 = pnand %p1134_p13, %p1128_p10 }
 0x245   :  { %v1026_v24 = vpop.eup %1025 }
 0x246   :  { %v526_v25 = vadd.f32 1.0, %v1026_v24  ;;  %v1028_v26 = vpop.eup %1027 }
 0x247   :  { %v527_v27 = vadd.f32 1.0, %v1028_v26  ;;  %v1030_v28 = vpop.eup %1029 }
 0x248   :  { %1033 = vrcp.f32 %v526_v25  ;;  %v1032_v29 = vpop.eup %1031 }
 0x249   :  { %1035 = vrcp.f32 %v527_v27  ;;  %v528_v38 = vadd.f32 1.0, %v1032_v29 }
 0x24b   :  { %1037 = vrcp.f32 %v528_v38 }
 0x252   :  { %v1034_v33 = vpop.eup %1033 }
 0x253   :  { %v537_v34 = vmul.f32 %v1034_v33, %v1030_v28  ;;  %v1036_v35 = vpop.eup %1035 }
 0x254   :  { %v536_v59 = vmul.f32 %v1036_v35, %v1468_v52 }
 0x255   :  { %v1038_v62 = vpop.eup %1037 }
 0x256   :  { %v538_v60 = vadd.f32 %v537_v34, %v536_v59 }
 0x258   :  { %1039 = vtanh.f32 %v538_v60  ;;  %v1516_v61 = vsel %vm550_vm4, %v538_v60, %v1468_v52 }
 0x262   :  { %v1040_v63 = vpop.eup %1039 }
 0x263   :  { %v540_v0 = vmul.f32 %v1040_v63, %v1038_v62 }
 0x265   :  { %v1519_v2 = vsel %vm550_vm4, %v540_v0, %v1471_v57 }
 0x266   :  { %v555_v7 = vpack.c.bf16 %v1519_v2, %v1519_v2 }
 0x268   :  { %610 = vmatmul.mubr.bf16.vlgmr.msra.gmra.mrb[8].mxu0 %v555_v7  ;;  %651 = vmatmul.mubr.bf16.vlgmr.msra.gmra.mrb[8].mxu1 %v555_v7 }
 0x269   :  { %919 = vmatpush3.bf16.msra.mxu0 %v1001_v31  ;;  %934 = vmatprep.mubr.msk.bf16.mxu0 %vm1210_vm5, %v1209_v32 }
 0x26a   :  { %920 = vmatprep.subr.bf16.mxu0 %v1209_v32 }
 0x26d   :  { %921 = vmatpush3.bf16.msra.mxu0 %v1002_v37 }
 0x26e   :  { %922 = vmatprep.subr.bf16.mxu0 %v1209_v32 }
 0x271   :  { %923 = vmatpush3.bf16.msra.mxu0 %v1003_v39 }
 0x272   :  { %924 = vmatprep.subr.bf16.mxu0 %v1209_v32 }
 0x275   :  { %925 = vmatpush3.bf16.msra.mxu0 %v1004_v40 }
 0x276   :  { %926 = vmatprep.subr.bf16.mxu0 %v1209_v32 }
 0x279   :  { %927 = vmatpush3.bf16.msra.mxu0 %v1005_v44 }
 0x27a   :  { %928 = vmatprep.subr.bf16.mxu0 %v1209_v32 }
 0x27d   :  { %929 = vmatpush3.bf16.msra.mxu0 %v1006_v42 }
 0x27e   :  { %930 = vmatprep.subr.bf16.mxu0 %v1209_v32 }
 0x281   :  { %931 = vmatpush3.bf16.msra.mxu0 %v1007_v45 }
 0x282   :  { %932 = vmatprep.subr.bf16.mxu0 %v1209_v32 }
 0x285   :  { %933 = vmatpush3.bf16.msra.mxu0 %v1008_v47 }
 0x33b   :  { %v611_v51 = vpop.f32.mrb[8].mxu0  ;;  %v652_v52 = vpop.f32.mrb[8].mxu1 }
 0x33c   :  { %v612_v53 = vadd.f32 %v611_v51, %v560_v49  ;;  %v613_v54 = vpop.f32.mrb[9].mxu0  ;;  %v654_v55 = vpop.f32.mrb[9].mxu1  ;;  %v653_v11 = vadd.f32 %v652_v52, %v568_v9 }
 0x33d   :  { %v614_v57 = vadd.f32 %v613_v54, %v564_v50  ;;  %v615_v58 = vpop.f32.mrb[10].mxu0  ;;  %v656_v3 = vpop.f32.mrb[10].mxu1  ;;  %v655_v43 = vadd.f32 %v654_v55, %v572_v10 }
 0x33e   :  { %v898_v4 = vmul.f32 -1.442695, %v612_v53  ;;  %v616_v5 = vpop.f32.mrb[11].mxu0  ;;  %v657_v6 = vpop.f32.mrb[11].mxu1  ;;  %v900_v12 = vmul.f32 -1.442695, %v653_v11 }
 0x33f   :  { %v899_v8 = vmul.f32 -1.442695, %v614_v57 }
 0x340   :  { %1041 = vpow2.f32 %v898_v4 }
 0x341   :  { %1043 = vpow2.f32 %v899_v8 }
 0x342   :  { %1045 = vtanh.f32 %v655_v43 }
 0x343   :  { %1047 = vpow2.f32 %v900_v12 }
 0x34a   :  { %v1042_v13 = vpop.eup %1041 }
 0x34b   :  { %v668_v14 = vadd.f32 1.0, %v1042_v13  ;;  %v1044_v15 = vpop.eup %1043 }
 0x34c   :  { %v669_v16 = vadd.f32 1.0, %v1044_v15  ;;  %v1046_v18 = vpop.eup %1045 }
 0x34d   :  { %1049 = vrcp.f32 %v668_v14  ;;  %v1048_v19 = vpop.eup %1047 }
 0x34e   :  { %1051 = vrcp.f32 %v669_v16  ;;  %v670_v56 = vadd.f32 1.0, %v1048_v19 }
 0x350   :  { %1053 = vrcp.f32 %v670_v56 }
 0x357   :  { %v1050_v1 = vpop.eup %1049 }
 0x358   :  { %v679_v20 = vmul.f32 %v1050_v1, %v1046_v18  ;;  %v1052_v21 = vpop.eup %1051 }
 0x359   :  { %v678_v22 = vmul.f32 %v1052_v21, %v1516_v61 }
 0x35a   :  { %v1054_v25 = vpop.eup %1053 }
 0x35b   :  { %v680_v23 = vadd.f32 %v679_v20, %v678_v22 }
 0x35d   :  { %1055 = vtanh.f32 %v680_v23  ;;  %v694_v24 = vsel %vm692_vm6, %v680_v23, %v1516_v61 }
 0x35e   :  { %696 = vst [vmem:[#allocation12] sm:$0x1] %v694_v24 }
 0x367   :  { %v1056_v26 = vpop.eup %1055 }
 0x368   :  { %v682_v27 = vmul.f32 %v1056_v26, %v1054_v25 }
 0x36a   :  { %v693_v28 = vsel %vm692_vm6, %v682_v27, %v1519_v2 }
 0x36b   :  { %v697_v29 = vpack.c.bf16 %v693_v28, %v693_v28  ;;  %695 = vst [vmem:[#allocation10] sm:$0x1] %v693_v28 }
 0x36d   :  { %935 = vmatmul.mubr.bf16.vlgmr.msra.gmra.mrb[12].mxu0 %v697_v29 }
 0x440   :  { %v797_v30 = vpop.f32.mrb[12].mxu0 }
 0x441   :  { %v798_v33 = vadd.f32 %v797_v30, %v714_v41  ;;  %v936_v34 = vpop.f32.mrb[13].mxu0 }
 0x442   :  { %v800_v35 = vpop.f32.mrb[14].mxu0 }
 0x443   :  { %v937_v36 = vpop.f32.mrb[15].mxu0  ;;  %v804_v38 = vsel %vm803_vm7, %v798_v33, -inf }
 0x444   :  { %805 = vmax.xlane.f32.xlu1 %v804_v38 }
 0x4d1   :  { %v806_v59 = vpop.xlane.xlu1 %805 }
 0x4d2   :  { %v807_v60 = vsub.f32 %v798_v33, %v806_v59 }
 0x4d4   :  { %v808_v61 = vmul.f32 1.442695, %v807_v60 }
 0x4d6   :  { %1057 = vpow2.f32 %v808_v61 }
 0x4e0   :  { %v1058_v62 = vpop.eup %1057 }
 0x4e1   :  { %v810_v63 = vsel %vm803_vm7, %v1058_v62, 0.0 }
 0x4e2   :  { %811 = vadd.xlane.f32.xlu0 %v810_v63 }
 0x4e3   :  { %1138 = shalt.err (!%p1135_p0)
}
 0x4e4   :  { %s1139_s2 = scalar_lea.hbm %s1578_s8, 16 }
 0x4e5   :  { %p1140_p1 = scmp.ne.s32.totalorder %s1578_s8, %s1139_s2  ;;  %p1143_p2 = scmp.lt.u32.totalorder %s1139_s2, %s1578_s8 }
 0x4e7   :  { %p1145_p3 = pnand %p1143_p2, %p1140_p1 }
 0x4e9   :  { %1148 = shalt.err (!%p1145_p3)
}
 0x4ea   :  { %836 = dma.vmem_to_hbm [thread:$0]  %s834_s30, 16, %s1578_s8, [#allocation11]  }
 0x4eb   :  { %s1212_s19 = smov [#allocation12]  }
 0x4ec   :  { %s843_s1 = sshll.u32 %s1212_s19, 4  ;;  %s844_s1 = int_to_ptr.vmem [resolvable:$true] %s843_s1 }
 0x4ed   :  { %s1149_s20 = scalar_lea.vmem %s844_s1, 16  ;;  %s1153_s21 = scalar_lea.vmem %s844_s1, 32 }
 0x4ee   :  { %p1150_p4 = scmp.ne.s32.totalorder %s844_s1, %s1149_s20  ;;  %p1154_p5 = scmp.lt.s32.totalorder %s844_s1, %s844_s1 }
 0x4ef   :  { %p1155_p6 = scmp.lt.s32.totalorder %s1153_s21, %s1149_s20 }
 0x4f1   :  { %p1156_p7 = por %p1155_p6, %p1154_p5 }
 0x4f3   :  { %p1157_p8 = pnand %p1156_p7, %p1150_p4 }
 0x4f5   :  { %1160 = shalt.err (!%p1157_p8)
}
 0x4f6   :  { %s1161_s24 = scalar_lea.hbm %s1579_s9, 16 }
 0x4f7   :  { %p1162_p9 = scmp.ne.s32.totalorder %s1579_s9, %s1161_s24  ;;  %p1165_p10 = scmp.lt.u32.totalorder %s1161_s24, %s1579_s9 }
 0x4f9   :  { %p1167_p11 = pnand %p1165_p10, %p1162_p9 }
 0x4fb   :  { %1170 = shalt.err (!%p1167_p11)
}
 0x4fc   :  { %846 = dma.vmem_to_hbm [thread:$0]  %s844_s1, 16, %s1579_s9, [#allocation11]  }
 0x4fd   :  { %s1213_s27 = smov [#allocation9]  }
 0x4fe   :  { %s823_s4 = sshll.u32 %s1213_s27, 4  ;;  %s824_s4 = int_to_ptr.vmem [resolvable:$true] %s823_s4 }
 0x4ff   :  { %s1171_s28 = scalar_lea.vmem %s824_s4, 16  ;;  %s1175_s29 = scalar_lea.vmem %s824_s4, 32 }
 0x500   :  { %p1172_p12 = scmp.ne.s32.totalorder %s824_s4, %s1171_s28  ;;  %p1176_p13 = scmp.lt.s32.totalorder %s824_s4, %s824_s4 }
 0x501   :  { %p1177_p0 = scmp.lt.s32.totalorder %s1175_s29, %s1171_s28 }
 0x503   :  { %p1178_p1 = por %p1177_p0, %p1176_p13 }
 0x505   :  { %p1179_p2 = pnand %p1178_p1, %p1172_p12 }
 0x56f   :  { %v812_v0 = vpop.xlane.xlu0 %811 }
 0x570   :  { %1059 = vlog2.f32 %v812_v0 }
 0x57a   :  { %v1060_v2 = vpop.eup %1059 }
 0x57b   :  { %v814_v7 = vmul.f32 0.6931472, %v1060_v2 }
 0x57d   :  { %v815_v31 = vsub.f32 %v807_v60, %v814_v7 }
 0x57f   :  { %816 = vst [vmem:[#allocation9] sm:$0x1] %v815_v31 }
 0x580   :  { %1182 = shalt.err (!%p1179_p2)
}
 0x581   :  { %s1183_s9 = scalar_lea.hbm %s1577_s7, 16 }
 0x582   :  { %p1184_p3 = scmp.ne.s32.totalorder %s1577_s7, %s1183_s9  ;;  %p1187_p4 = scmp.lt.u32.totalorder %s1183_s9, %s1577_s7 }
 0x584   :  { %p1189_p5 = pnand %p1187_p4, %p1184_p3 }
 0x586   :  { %1192 = shalt.err (!%p1189_p5)
}
 0x587   :  { %826 = dma.vmem_to_hbm [thread:$0]  %s824_s4, 16, %s1577_s7, [#allocation5]  }
 0x588   :  { %1197 = dma.done.wait [#allocation5], 16  }
 0x589   :  { %1198 = vsyncadd [#allocation5], 4294967280 }
 0x58a   :  { %1199 = dma.done.wait [#allocation11], 32  }
 0x58b   :  { %1200 = vsyncadd [#allocation11], 4294967264 }
 0x58c   :  { %856 = vsyncpa [#allocation4], 1 }
 0x58d   :  { %857 = vsyncpa [#allocation7], 1 }
 0x58e   :  { %858 = vsyncpa [#allocation5], 1 }
 0x58f   :  { %859 = vsyncpa [#allocation11], 1 }

</bundles_post_ra>
